<compile_context>
chip_gen: v6e
topology: v6e:2x2x1
jax: 0.10.0
libtpu: 0.0.40
codegen_flags: <defaults>
</compile_context>

<pallas_src>
import functools

import jax
import jax.numpy as jnp
from jax.experimental import pallas as pl
from jax.experimental.pallas import tpu as pltpu


def _maxpool_s1_flat_kernel(x_ref, o_ref, *, H, W):
    # x_ref / o_ref: (P, H*W) lane-dense blocks in VMEM.
    x = x_ref[...]
    HW = H * W

    # Single 2-D iota over the flattened plane; both masks derive from it and
    # broadcast over the P planes in the block. Grid-invariant, but in the
    # mem-bound regime this VALU work is free filler under the DMAs.
    idx = jax.lax.broadcasted_iota(jnp.int32, (1, HW), 1)
    is_last_col = (idx % W) == (W - 1)      # last column of each image row
    is_last_row = idx >= (H - 1) * W        # flattened last image row

    # Right neighbor with replicate padding at the last column.
    # roll(shift=HW-1) == roll(shift=-1): element (f+1) moves to position f.
    # For c < W-1 that element is x[r, c+1] (same row); the wrap / row-crossing
    # positions (c == W-1) are overwritten by the mask.
    x_right = pltpu.roll(x, shift=HW - 1, axis=1)
    m = jnp.maximum(x, jnp.where(is_last_col, x, x_right))

    # Down neighbor of m with replicate padding at the last row.
    # roll(shift=HW-W) == roll(shift=-W): element (f+W) moves to position f.
    m_down = pltpu.roll(m, shift=HW - W, axis=1)
    o_ref[...] = jnp.maximum(m, jnp.where(is_last_row, m, m_down))


def _vmem_budget_and_target():
    """(physical VMEM, budget for our 4 live blocks, default target block bytes).

    Conservative fallback (treat as v7x) if the hardware query is unavailable.
    """
    vmem_cap = 64 << 20
    try:
        vmem_cap = int(pltpu.get_tpu_info().vmem_capacity_bytes)
    except Exception:
        pass
    if vmem_cap <= (64 << 20):
        # v7x: 64 MiB VMEM/TC, ~3.2 TB/s HBM -> bigger blocks amortize the
        # ~0.35 us per-step overhead; keep 4 buffers well inside 64 MiB.
        return vmem_cap, 40 << 20, 8 << 20
    # v5e / v6e: 128 MiB VMEM, slower HBM.
    return vmem_cap, 96 << 20, 4 << 20


def maxpool_stride1(x, *, target_block_bytes=None):
    """x: (N, C, H, W) -> (N, C, H, W), identical to
    F.max_pool2d(F.pad(x, (0,1,0,1), mode='replicate'), 2, stride=1)."""
    N, C, H, W = x.shape
    NC, HW = N * C, H * W
    itemsize = jnp.dtype(x.dtype).itemsize
    plane_bytes = HW * itemsize

    vmem_cap, vmem_budget, default_target = _vmem_budget_and_target()
    if target_block_bytes is None:
        target_block_bytes = default_target

    # One block budget: 2-deep pipelined input + output = 4 live blocks + headroom.
    block_budget = max(1, (vmem_budget - (4 << 20)) // 4)
    block_bytes_target = min(target_block_bytes, block_budget)

    # Sub-32-bit dtypes pack along sublanes: min tile rows = 8 (f32) / 16 (bf16) / 32 (i8).
    sub = max(8, 32 // itemsize)

    P = max(1, block_bytes_target // plane_bytes)
    P = min(P, NC)
    if P >= sub:
        P = (P // sub) * sub  # round DOWN: never inflate past target / VMEM budget
    if NC >= 4 * sub:
        # Keep >= 4 grid steps so both v7x TensorCores get work and DMAs pipeline.
        P = min(P, max(sub, (NC // 4 // sub) * sub))
    P = max(1, P)
    # TODO(synk): planes larger than the per-block VMEM budget would need H*W tiling
    # with a one-row halo; not needed for typical detector feature maps.

    xf = x.reshape(NC, HW)
    grid = (pl.cdiv(NC, P),)  # partial last block is masked by Pallas; rows independent

    block_bytes = P * plane_bytes
    vmem_limit = int(min(vmem_cap, max(16 << 20, 4 * block_bytes + (4 << 20))))

    cost = pl.CostEstimate(
        flops=3 * NC * HW,                       # 3 maxes per output element
        transcendentals=0,
        bytes_accessed=2 * NC * HW * itemsize,   # read + write once: bandwidth-bound
    )

    out = pl.pallas_call(
        functools.partial(_maxpool_s1_flat_kernel, H=H, W=W),
        out_shape=jax.ShapeDtypeStruct((NC, HW), x.dtype),
        grid=grid,
        in_specs=[pl.BlockSpec((P, HW), lambda i: (i, 0))],
        out_specs=pl.BlockSpec((P, HW), lambda i: (i, 0)),
        compiler_params=pltpu.CompilerParams(
            dimension_semantics=("parallel",),
            vmem_limit_bytes=vmem_limit,
        ),
        cost_estimate=cost,
    )(xf)

    return out.reshape(N, C, H, W)


def _reference(x):
    # Pure-JAX reference: replicate-pad right/bottom by 1, then 2x2 stride-1 max.
    xp = jnp.pad(x, ((0, 0), (0, 0), (0, 1), (0, 1)), mode="edge")
    return jnp.maximum(
        jnp.maximum(xp[:, :, :-1, :-1], xp[:, :, :-1, 1:]),
        jnp.maximum(xp[:, :, 1:, :-1], xp[:, :, 1:, 1:]),
    )


if __name__ == "__main__":
    key = jax.random.PRNGKey(0)
    x = jax.random.normal(key, (2, 4, 16, 16), dtype=jnp.float32)

    out = maxpool_stride1(x)
    out = jax.block_until_ready(out)

    ref = _reference(x)
    assert out.shape == x.shape
    assert jnp.allclose(out, ref, atol=1e-6, rtol=1e-6), "mismatch vs reference"

    # Also exercise a non-divisible plane count (partial last block path).
    x2 = jax.random.normal(jax.random.PRNGKey(1), (3, 7, 13, 9), dtype=jnp.float32)
    out2 = jax.block_until_ready(maxpool_stride1(x2, target_block_bytes=4 * 13 * 9 * 4))
    assert jnp.allclose(out2, _reference(x2), atol=1e-6, rtol=1e-6), "mismatch (ragged)"

    print("KERNEL_OK")
</pallas_src>

<mosaic_0001>
module attributes {stable_mosaic.version = 11 : i64} {
  func.func @_maxpool_s1_flat_kernel(%arg0: i32, %arg1: memref<8x256xf32, #tpu.memory_space<vmem>>, %arg2: memref<8x256xf32, #tpu.memory_space<vmem>>) attributes {dimension_semantics = [#tpu.dimension_semantics<parallel>], iteration_bounds = array<i64: 1>, scalar_prefetch = 0 : i64, scratch_operands = 0 : i64, tpu.core_type = #tpu.core_type<tc>, window_params = [{transform_indices = @transform_0, window_bounds = array<i64: 8, 256>}, {transform_indices = @transform_1, window_bounds = array<i64: 8, 256>}]} {
    %c0 = arith.constant 0 : index
    %c0_0 = arith.constant 0 : index
    %0 = vector.load %arg1[%c0, %c0_0] : memref<8x256xf32, #tpu.memory_space<vmem>>, vector<8x256xf32>
    %1 = tpu.iota {dimensions = array<i32: 1>} : vector<1x256xi32>
    %c16_i32 = arith.constant 16 : i32
    %c0_i32 = arith.constant 0 : i32
    %2 = arith.cmpi eq, %c16_i32, %c0_i32 : i32
    %c1_i32 = arith.constant 1 : i32
    %3 = arith.select %2, %c1_i32, %c16_i32 : i32
    %4 = vector.broadcast %3 : i32 to vector<1x256xi32>
    %5 = arith.remsi %1, %4 : vector<1x256xi32>
    %c0_i32_1 = arith.constant 0 : i32
    %6 = vector.broadcast %c0_i32_1 : i32 to vector<1x256xi32>
    %7 = arith.cmpi ne, %5, %6 : vector<1x256xi32>
    %c0_i32_2 = arith.constant 0 : i32
    %8 = vector.broadcast %c0_i32_2 : i32 to vector<1x256xi32>
    %9 = arith.cmpi slt, %5, %8 : vector<1x256xi32>
    %c0_i32_3 = arith.constant 0 : i32
    %10 = arith.cmpi slt, %3, %c0_i32_3 : i32
    %11 = vector.broadcast %10 : i1 to vector<1x256xi1>
    %12 = vector.broadcast %11 : vector<1x256xi1> to vector<1x256xi1>
    %13 = arith.xori %9, %12 : vector<1x256xi1>
    %14 = arith.andi %13, %7 : vector<1x256xi1>
    %15 = vector.broadcast %3 : i32 to vector<1x256xi32>
    %16 = arith.addi %5, %15 : vector<1x256xi32>
    %17 = arith.select %14, %16, %5 : vector<1x256xi1>, vector<1x256xi32>
    %c15_i32 = arith.constant 15 : i32
    %18 = vector.broadcast %c15_i32 : i32 to vector<1x256xi32>
    %19 = arith.cmpi eq, %17, %18 : vector<1x256xi32>
    %c240_i32 = arith.constant 240 : i32
    %20 = vector.broadcast %c240_i32 : i32 to vector<1x256xi32>
    %21 = arith.cmpi sge, %1, %20 : vector<1x256xi32>
    %c255_i32 = arith.constant 255 : i32
    %22 = tpu.dynamic_rotate %0 by %c255_i32 dim 1 : vector<8x256xf32>, i32 -> vector<8x256xf32>
    %23 = vector.shape_cast %19 : vector<1x256xi1> to vector<1x256xi1>
    %24 = vector.broadcast %23 : vector<1x256xi1> to vector<8x256xi1>
    %25 = arith.select %24, %0, %22 : vector<8x256xi1>, vector<8x256xf32>
    %26 = arith.maximumf %0, %25 : vector<8x256xf32>
    %c240_i32_4 = arith.constant 240 : i32
    %27 = tpu.dynamic_rotate %26 by %c240_i32_4 dim 1 : vector<8x256xf32>, i32 -> vector<8x256xf32>
    %28 = vector.shape_cast %21 : vector<1x256xi1> to vector<1x256xi1>
    %29 = vector.broadcast %28 : vector<1x256xi1> to vector<8x256xi1>
    %30 = arith.select %29, %26, %27 : vector<8x256xi1>, vector<8x256xf32>
    %31 = arith.maximumf %26, %30 : vector<8x256xf32>
    %c0_5 = arith.constant 0 : index
    %c0_6 = arith.constant 0 : index
    %32 = vector.load %arg2[%c0_5, %c0_6] : memref<8x256xf32, #tpu.memory_space<vmem>>, vector<8x256xf32>
    tpu.vector_store %arg2[%c0_5, %c0_6], %31 {strides = array<i32>} : memref<8x256xf32, #tpu.memory_space<vmem>>, vector<8x256xf32>,
    return
  }
  func.func @transform_0(%arg0: i32) -> (i32, i32) {
    %c0_i32 = arith.constant 0 : i32
    %c0_i32_0 = arith.constant 0 : i32
    return %arg0, %c0_i32 : i32, i32
  }
  func.func @transform_1(%arg0: i32) -> (i32, i32) {
    %c0_i32 = arith.constant 0 : i32
    %c0_i32_0 = arith.constant 0 : i32
    return %arg0, %c0_i32 : i32, i32
  }
}

</mosaic_0001>

<bundles_post_ra>
// kernel: tpu_custom_call.1
= control target key start
LH: loop header
LB: loop body
LE: loop exit
PB: predicated region body
PF: predicated region fallthrough
CT: control target
= control target key end

     0   :  { %6 = vsyncpa [#allocation3], 0  ;;  %s169_s0 = inlined_call_operand.hbm [shape: f32[8,256], index: 0, kind: input, shape index: {}]   ;;  %s170_s1 = inlined_call_operand.hbm [shape: f32[8,256], index: 1, kind: output, shape index: {}]  }
   0x1   :  { %7 = vsyncpa [#allocation4], 0  ;;  %s149_s6 = smov [#allocation2]  }
   0x2   :  { %s14_s7 = sshll.u32 %s149_s6, 4  ;;  %s15_s7 = int_to_ptr.vmem [resolvable:$true] %s14_s7 }
   0x3   :  { %s113_s8 = scalar_lea.vmem %s15_s7, 256  ;;  %p118_p1 = scmp.lt.s32.totalorder %s15_s7, %s15_s7 }
   0x4   :  { %p114_p0 = scmp.ne.s32.totalorder %s15_s7, %s113_s8  ;;  %p119_p2 = scmp.lt.s32.totalorder %s113_s8, %s113_s8 }
   0x6   :  { %p120_p3 = por %p119_p2, %p118_p1 }
   0x8   :  { %p121_p4 = pnand %p120_p3, %p114_p0 }
   0xa   :  { %124 = shalt.err (!%p121_p4)
}
   0xb   :  { %17 = dma.hbm_to_vmem [thread:$0]  %s169_s0, 256, %s15_s7, [#allocation3]  }
   0xc   :  { %145 = dma.done.wait [#allocation3], 256  }
   0xd   :  { %146 = vsyncadd [#allocation3], 4294967040  ;;  %v21_v0 = vld [vmem:[#allocation2] sm:$0xff]  ;;  %s150_s11 = smov 127   ;;  %v22_v1 = vld [vmem:[#allocation2 + $0x8] sm:$0xff]  ;;  %v23_v2 = vlaneseq  ;;  %s151_s0 = smov 112  }
   0xe   :  { %54 = vrot.lane.b32.xlu0 %v21_v0, %s150_s11  ;;  %s152_s12 = smov [#allocation5]  }
   0xf   :  { %v24_v3 = vand.u32 127, %v23_v2  ;;  %s92_s13 = sshll.u32 %s152_s12, 4  ;;  %s93_s13 = int_to_ptr.vmem [resolvable:$true] %s92_s13 }
  0x10   :  { %s125_s14 = scalar_lea.vmem %s93_s13, 256  ;;  %p130_p6 = scmp.lt.s32.totalorder %s93_s13, %s93_s13 }
  0x11   :  { %v25_v4 = vadd.s32 128, %v24_v3  ;;  %v30_v5 = vand.u32 15, %v24_v3  ;;  %vm58_vm0 = vcmp.lt.s32.totalorder %v24_v3, 127  ;;  %vm73_vm3 = vcmp.lt.s32.totalorder %v24_v3, 112  ;;  %p126_p5 = scmp.ne.s32.totalorder %s93_s13, %s125_s14  ;;  %p131_p7 = scmp.lt.s32.totalorder %s125_s14, %s125_s14 }
  0x12   :  { %56 = vrot.lane.b32.xlu0 %v22_v1, %s150_s11 }
  0x13   :  { %v37_v7 = vand.u32 15, %v25_v4  ;;  %vm50_vm1 = vcmp.eq.s32.totalorder %v30_v5, 15  ;;  %vm53_vm4 = vcmp.ge.s32.totalorder %v25_v4, 240  ;;  %p132_p8 = por %p131_p7, %p130_p6 }
  0x15   :  { %vm51_vm2 = vcmp.eq.s32.totalorder %v37_v7, 15  ;;  %p133_p9 = pnand %p132_p8, %p126_p5 }
  0x80   :  { %v55_v6 = vpop.permute.xlu0 %54 }
  0x84   :  { %v57_v8 = vpop.permute.xlu0 %56 }
  0x85   :  { %v59_v9 = vsel %vm58_vm0, %v55_v6, %v57_v8  ;;  %v60_v10 = vsel %vm58_vm0, %v57_v8, %v55_v6 }
  0x86   :  { %v65_v11 = vsel %vm50_vm1, %v21_v0, %v59_v9  ;;  %v66_v13 = vsel %vm51_vm2, %v22_v1, %v60_v10 }
  0x87   :  { %v67_v12 = vmax.f32 %v21_v0, %v65_v11  ;;  %v68_v14 = vmax.f32 %v22_v1, %v66_v13 }
  0x89   :  { %69 = vrot.lane.b32.xlu1 %v67_v12, %s151_s0 }
  0x8d   :  { %71 = vrot.lane.b32.xlu1 %v68_v14, %s151_s0 }
  0xfb   :  { %v70_v15 = vpop.permute.xlu1 %69 }
  0xff   :  { %v72_v16 = vpop.permute.xlu1 %71 }
 0x100   :  { %v74_v17 = vsel %vm73_vm3, %v70_v15, %v72_v16  ;;  %v75_v18 = vsel %vm73_vm3, %v72_v16, %v70_v15 }
 0x101   :  { %v81_v19 = vsel %vm53_vm4, %v68_v14, %v75_v18  ;;  %v82_v20 = vmax.f32 %v67_v12, %v74_v17 }
 0x102   :  { %v83_v21 = vmax.f32 %v68_v14, %v81_v19 }
 0x103   :  { %84 = vst [vmem:[#allocation5] sm:$0xff] %v82_v20 }
 0x104   :  { %85 = vst [vmem:[#allocation5 + $0x8] sm:$0xff] %v83_v21 }
 0x105   :  { %136 = shalt.err (!%p133_p9)
}
 0x106   :  { %95 = dma.vmem_to_hbm [thread:$0]  %s93_s13, 256, %s170_s1, [#allocation4]  }
 0x107   :  { %147 = dma.done.wait [#allocation4], 256  }
 0x108   :  { %148 = vsyncadd [#allocation4], 4294967040 }
 0x109   :  { %99 = vsyncpa [#allocation3], 1 }
 0x10a   :  { %100 = vsyncpa [#allocation4], 1 }

</bundles_post_ra>
